<compile_context>
chip_gen: v7x
topology: tpu7x:2x2x1
jax: 0.10.0
libtpu: 0.0.40
codegen_flags: <defaults>
</compile_context>

<pallas_src>
import functools
import math

import jax
import jax.numpy as jnp
from jax import lax
from jax.experimental import pallas as pl
from jax.experimental.pallas import tpu as pltpu


def _pick_tile(dim, prefs):
    """Largest preferred tile that evenly divides `dim`, else the full extent."""
    for p in prefs:
        if dim >= p and dim % p == 0:
            return p
    return dim


# ---------------------------------------------------------------------------
# Tiled matmul with f32 VMEM accumulator (K-reduction on the last grid axis).
# ---------------------------------------------------------------------------
def _matmul_kernel(x_ref, w_ref, o_ref, acc_ref):
    @pl.when(pl.program_id(2) == 0)
    def _():
        acc_ref[...] = jnp.zeros_like(acc_ref)

    acc_ref[...] += jnp.dot(x_ref[...], w_ref[...],
                            preferred_element_type=jnp.float32)

    # Only cast + store the output tile once, on the last K step.
    @pl.when(pl.program_id(2) == pl.num_programs(2) - 1)
    def _():
        o_ref[...] = acc_ref[...].astype(o_ref.dtype)


def _matmul(x, w, out_dtype):
    """x: (M, K), w: (K, N) -> (M, N), f32 accumulation."""
    M, K = x.shape
    K2, N = w.shape
    assert K == K2
    # tk capped at 512 so f32/bf16 tiles + double buffering stay well inside
    # v5e's 16 MiB default scoped VMEM.
    tm = _pick_tile(M, (512, 256, 128))
    tn = _pick_tile(N, (512, 256, 128))
    tk = _pick_tile(K, (512, 256, 128))
    grid = (M // tm, N // tn, K // tk)
    itemsize = jnp.dtype(x.dtype).itemsize
    cost = pl.CostEstimate(
        flops=2 * M * N * K,
        transcendentals=0,
        bytes_accessed=int((M * K + K * N) * itemsize
                           + M * N * jnp.dtype(out_dtype).itemsize),
    )
    return pl.pallas_call(
        _matmul_kernel,
        out_shape=jax.ShapeDtypeStruct((M, N), out_dtype),
        grid_spec=pltpu.PrefetchScalarGridSpec(
            num_scalar_prefetch=0,
            grid=grid,
            in_specs=[
                pl.BlockSpec((tm, tk), lambda i, j, k: (i, k)),
                pl.BlockSpec((tk, tn), lambda i, j, k: (k, j)),
            ],
            out_specs=pl.BlockSpec((tm, tn), lambda i, j, k: (i, j)),
            scratch_shapes=[pltpu.VMEM((tm, tn), jnp.float32)],
        ),
        compiler_params=pltpu.CompilerParams(
            dimension_semantics=("parallel", "parallel", "arbitrary")
        ),
        cost_estimate=cost,
    )(x, w)


# ---------------------------------------------------------------------------
# Fused RoPE + flash attention (online softmax, causal, GQA aware).
# Layouts:  q: (B, S, NH, D), k/v: (B, S, NKV, D), cos/sin: (S, D) f32.
# No wrapper-level transposes are needed before or after this kernel.
# ---------------------------------------------------------------------------
def _flash_rope_kernel(q_ref, k_ref, v_ref, cq_ref, sq_ref, ck_ref, sk_ref,
                       o_ref, m_sc, l_sc, acc_sc, *,
                       scale, causal, num_heads, num_kv_heads,
                       compute_dtype, approx_recip):
    qi = pl.program_id(1)
    ki = pl.program_id(2)
    group = num_heads // num_kv_heads
    block_q = q_ref.shape[1]
    block_k = k_ref.shape[1]

    @pl.when(ki == 0)
    def _():
        m_sc[...] = jnp.full_like(m_sc, -jnp.inf)
        l_sc[...] = jnp.zeros_like(l_sc)
        acc_sc[...] = jnp.zeros_like(acc_sc)

    def _rope(x, cos_t, sin_t):
        # x*cos + rotate_half(x)*sin, rotate_half(x) = concat(-x2, x1).
        half = x.shape[-1] // 2
        rot = jnp.concatenate([-x[:, half:], x[:, :half]], axis=-1)
        return x * cos_t + rot * sin_t

    def compute_block():
        cq = cq_ref[...]
        sq = sq_ref[...]
        ck = ck_ref[...]
        sk = sk_ref[...]
        if causal:
            row = qi * block_q + lax.broadcasted_iota(
                jnp.int32, (block_q, block_k), 0)
            col = ki * block_k + lax.broadcasted_iota(
                jnp.int32, (block_q, block_k), 1)
            visible = row >= col

        # RoPE each K head once; reused by every query head in its group.
        k_rot = []
        for kh in range(num_kv_heads):
            kt = k_ref[0, :, kh, :].astype(jnp.float32)
            k_rot.append(_rope(kt, ck, sk).astype(compute_dtype))

        for h in range(num_heads):
            kh = h // group
            qt = q_ref[0, :, h, :].astype(jnp.float32)
            q_rot = _rope(qt, cq, sq).astype(compute_dtype)
            # Contract the last dims directly (native MXU orientation, no .T).
            scores = lax.dot_general(
                q_rot, k_rot[kh],
                dimension_numbers=(((1,), (1,)), ((), ())),
                preferred_element_type=jnp.float32) * scale
            if causal:
                scores = jnp.where(visible, scores, -jnp.inf)
            m_prev = m_sc[h]                                     # (tq, 1)
            m_new = jnp.maximum(m_prev, scores.max(axis=-1, keepdims=True))
            alpha = jnp.exp(m_prev - m_new)
            p = jnp.exp(scores - m_new)
            l_sc[h] = alpha * l_sc[h] + p.sum(axis=-1, keepdims=True)
            acc_sc[h] = alpha * acc_sc[h] + jnp.dot(
                p.astype(compute_dtype),
                v_ref[0, :, kh, :].astype(compute_dtype),
                preferred_element_type=jnp.float32)
            m_sc[h] = m_new

    if causal:
        # Blocks strictly above the diagonal are skipped (and their K/V DMA is
        # elided via the clamped kv index_map in the wrapper).
        pl.when(ki <= qi)(compute_block)
    else:
        compute_block()

    @pl.when(ki == pl.num_programs(2) - 1)
    def _():
        for h in range(num_heads):
            if approx_recip:
                inv_l = pl.reciprocal(l_sc[h], approx=True)
            else:
                inv_l = 1.0 / l_sc[h]
            o_ref[0, :, h, :] = (acc_sc[h] * inv_l).astype(o_ref.dtype)


def _flash_attention_rope(q, k, v, cos, sin, *, scale, causal=True,
                          compute_dtype=jnp.bfloat16):
    B, S, NH, D = q.shape
    _, _, NKV, _ = k.shape
    assert v.shape == k.shape
    assert NH % NKV == 0
    assert cos.shape == (S, D) and sin.shape == (S, D)

    tq = _pick_tile(S, (256, 128))
    tk = tq  # equal Q/K blocks so the causal DMA clamp min(ki, qi) is exact
    grid = (B, S // tq, S // tk)
    approx_recip = bool(jnp.dtype(compute_dtype) != jnp.dtype(jnp.float32))

    def q_map(b, qi, ki):
        return (b, qi, 0, 0)

    if causal:
        def kv_map(b, qi, ki):
            # Clamp skipped blocks to an already-resident index -> DMA elided.
            return (b, jnp.minimum(ki, qi), 0, 0)

        def kpos_map(b, qi, ki):
            return (jnp.minimum(ki, qi), 0)
    else:
        def kv_map(b, qi, ki):
            return (b, ki, 0, 0)

        def kpos_map(b, qi, ki):
            return (ki, 0)

    def qpos_map(b, qi, ki):
        return (qi, 0)

    kernel = functools.partial(
        _flash_rope_kernel, scale=scale, causal=causal, num_heads=NH,
        num_kv_heads=NKV, compute_dtype=compute_dtype,
        approx_recip=approx_recip)

    itemsize = jnp.dtype(q.dtype).itemsize
    causal_frac = 0.5 if causal else 1.0
    cost = pl.CostEstimate(
        flops=int(4 * B * NH * S * S * D * causal_frac),
        transcendentals=int(B * NH * S * S * causal_frac),
        bytes_accessed=int((2 * q.size + k.size + v.size) * itemsize),
    )
    return pl.pallas_call(
        kernel,
        out_shape=jax.ShapeDtypeStruct((B, S, NH, D), q.dtype),
        grid_spec=pltpu.PrefetchScalarGridSpec(
            num_scalar_prefetch=0,
            grid=grid,
            in_specs=[
                pl.BlockSpec((1, tq, NH, D), q_map),
                pl.BlockSpec((1, tk, NKV, D), kv_map),
                pl.BlockSpec((1, tk, NKV, D), kv_map),
                pl.BlockSpec((tq, D), qpos_map),
                pl.BlockSpec((tq, D), qpos_map),
                pl.BlockSpec((tk, D), kpos_map),
                pl.BlockSpec((tk, D), kpos_map),
            ],
            out_specs=pl.BlockSpec((1, tq, NH, D), q_map),
            scratch_shapes=[
                pltpu.VMEM((NH, tq, 1), jnp.float32),   # running max m
                pltpu.VMEM((NH, tq, 1), jnp.float32),   # running sum l
                pltpu.VMEM((NH, tq, D), jnp.float32),   # output accumulator
            ],
        ),
        compiler_params=pltpu.CompilerParams(
            dimension_semantics=("parallel", "parallel", "arbitrary")
        ),
        cost_estimate=cost,
    )(q, k, v, cos, sin, cos, sin)


# ---------------------------------------------------------------------------
# Weight preprocessing (done ONCE at init, not per forward call).
# ---------------------------------------------------------------------------
def prepare_minicpm_attention_weights(w_q, w_k, w_v, w_o,
                                      compute_dtype=jnp.bfloat16):
    """PyTorch nn.Linear weights (out, in) -> fused/transposed kernel weights."""
    w_qkv_t = jnp.concatenate([w_q.T, w_k.T, w_v.T], axis=1).astype(compute_dtype)
    w_o_t = w_o.T.astype(compute_dtype)
    return w_qkv_t, w_o_t


# ---------------------------------------------------------------------------
# Full MiniCPMAttention forward.
# ---------------------------------------------------------------------------
def minicpm_attention(hidden_states, w_qkv_t, w_o_t, *,
                      num_heads, num_kv_heads, rope_theta=10000.0,
                      position_ids=None, compute_dtype=jnp.bfloat16):
    """hidden_states: (B, S, H). Weights from prepare_minicpm_attention_weights."""
    B, S, H = hidden_states.shape
    NH, NKV = num_heads, num_kv_heads
    D = H // NH
    assert NH * D == H
    assert w_qkv_t.shape == (H, (NH + 2 * NKV) * D)
    assert w_o_t.shape == (NH * D, H)
    M = B * S
    out_dtype = hidden_states.dtype

    # Fused QKV projection on bf16 (or f32) MXU inputs, f32 accumulation.
    x2d = hidden_states.reshape(M, H).astype(compute_dtype)
    qkv = _matmul(x2d, w_qkv_t.astype(compute_dtype), out_dtype=compute_dtype)

    # Free reshapes only (no HBM transposes): (M, heads*D) -> (B, S, heads, D).
    q = qkv[:, :NH * D].reshape(B, S, NH, D)
    k = qkv[:, NH * D:(NH + NKV) * D].reshape(B, S, NKV, D)
    v = qkv[:, (NH + NKV) * D:].reshape(B, S, NKV, D)

    # Rotary tables (fp32, matching MiniCPMRotaryEmbedding).
    if position_ids is None:
        t = jnp.arange(S, dtype=jnp.float32)
    else:
        # TODO(synk): per-batch (B, S) position_ids unsupported; 1-D positions only.
        t = jnp.asarray(position_ids, dtype=jnp.float32).reshape(-1)
    inv_freq = 1.0 / (rope_theta ** (jnp.arange(0, D, 2, dtype=jnp.float32) / D))
    freqs = jnp.outer(t, inv_freq)                   # (S, D/2)
    emb = jnp.concatenate([freqs, freqs], axis=-1)   # (S, D)
    cos = jnp.cos(emb)
    sin = jnp.sin(emb)

    attn = _flash_attention_rope(q, k, v, cos, sin,
                                 scale=1.0 / math.sqrt(D), causal=True,
                                 compute_dtype=compute_dtype)

    # (B, S, NH, D) -> (M, NH*D) is a free reshape; feeds o_proj directly.
    attn2d = attn.reshape(M, NH * D)
    out2d = _matmul(attn2d, w_o_t.astype(compute_dtype), out_dtype=out_dtype)
    return out2d.reshape(B, S, H)


# ---------------------------------------------------------------------------
# Pure-JAX reference (eager PyTorch semantics: RoPE, causal softmax, o_proj).
# ---------------------------------------------------------------------------
def _reference(x, w_q, w_k, w_v, w_o, *, num_heads, num_kv_heads,
               rope_theta=10000.0):
    B, S, H = x.shape
    D = H // num_heads
    q = (x @ w_q.T).reshape(B, S, num_heads, D).transpose(0, 2, 1, 3)
    k = (x @ w_k.T).reshape(B, S, num_kv_heads, D).transpose(0, 2, 1, 3)
    v = (x @ w_v.T).reshape(B, S, num_kv_heads, D).transpose(0, 2, 1, 3)

    inv_freq = 1.0 / (rope_theta ** (jnp.arange(0, D, 2, dtype=jnp.float32) / D))
    t = jnp.arange(S, dtype=jnp.float32)
    emb = jnp.concatenate([jnp.outer(t, inv_freq)] * 2, axis=-1)
    cos = jnp.cos(emb)[None, None]
    sin = jnp.sin(emb)[None, None]

    def rot(u):
        return jnp.concatenate([-u[..., D // 2:], u[..., :D // 2]], axis=-1)

    q = q * cos + rot(q) * sin
    k = k * cos + rot(k) * sin

    g = num_heads // num_kv_heads
    k = jnp.repeat(k, g, axis=1)
    v = jnp.repeat(v, g, axis=1)

    s = jnp.einsum("bhqd,bhkd->bhqk", q, k) / math.sqrt(D)
    mask = jnp.tril(jnp.ones((S, S), dtype=bool))
    s = jnp.where(mask[None, None], s, -jnp.inf)
    p = jax.nn.softmax(s, axis=-1)
    o = jnp.einsum("bhqk,bhkd->bhqd", p, v)
    o = o.transpose(0, 2, 1, 3).reshape(B, S, H)
    return o @ w_o.T


if __name__ == "__main__":
    # Small config consistent with the module: B=2, S=8, H=32, 4 heads, D=8.
    B, S, H = 2, 8, 32
    num_heads = 4
    num_kv_heads = 4   # the eager forward has no repeat_kv => MHA semantics
    D = H // num_heads

    key = jax.random.PRNGKey(0)
    kx, kq, kk, kv2, ko = jax.random.split(key, 5)
    x = jax.random.normal(kx, (B, S, H), dtype=jnp.float32)
    w_q = jax.random.normal(kq, (num_heads * D, H), dtype=jnp.float32) * (1.0 / H ** 0.5)
    w_k = jax.random.normal(kk, (num_kv_heads * D, H), dtype=jnp.float32) * (1.0 / H ** 0.5)
    w_v = jax.random.normal(kv2, (num_kv_heads * D, H), dtype=jnp.float32) * (1.0 / H ** 0.5)
    w_o = jax.random.normal(ko, (H, num_heads * D), dtype=jnp.float32) * (1.0 / (num_heads * D) ** 0.5)

    ref = _reference(x, w_q, w_k, w_v, w_o,
                     num_heads=num_heads, num_kv_heads=num_kv_heads)

    # Strict correctness check: full-f32 compute path.
    w_qkv_t32, w_o_t32 = prepare_minicpm_attention_weights(
        w_q, w_k, w_v, w_o, compute_dtype=jnp.float32)
    out32 = minicpm_attention(x, w_qkv_t32, w_o_t32,
                              num_heads=num_heads, num_kv_heads=num_kv_heads,
                              compute_dtype=jnp.float32)
    out32 = jax.block_until_ready(out32)
    assert out32.shape == (B, S, H)
    assert jnp.allclose(out32, ref, atol=2e-4, rtol=2e-4), "f32 mismatch vs reference"

    # Fast path: bf16 MXU inputs (default), f32 accumulation.
    w_qkv_tbf, w_o_tbf = prepare_minicpm_attention_weights(
        w_q, w_k, w_v, w_o, compute_dtype=jnp.bfloat16)
    outbf = minicpm_attention(x, w_qkv_tbf, w_o_tbf,
                              num_heads=num_heads, num_kv_heads=num_kv_heads)
    outbf = jax.block_until_ready(outbf)
    assert outbf.shape == (B, S, H)
    assert jnp.allclose(outbf.astype(jnp.float32), ref, atol=1e-1, rtol=1e-1), \
        "bf16 mismatch vs reference"

    print("KERNEL_OK")
</pallas_src>

<mosaic_0001>
module attributes {stable_mosaic.version = 11 : i64} {
  func.func @_matmul_kernel(%arg0: i32, %arg1: i32, %arg2: i32, %arg3: memref<16x32xf32, #tpu.memory_space<vmem>>, %arg4: memref<32x96xf32, #tpu.memory_space<vmem>>, %arg5: memref<16x96xf32, #tpu.memory_space<vmem>>, %arg6: memref<16x96xf32, #tpu.memory_space<vmem>>) attributes {dimension_semantics = [#tpu.dimension_semantics<parallel>, #tpu.dimension_semantics<parallel>, #tpu.dimension_semantics<arbitrary>], iteration_bounds = array<i64: 1, 1, 1>, scalar_prefetch = 0 : i64, scratch_operands = 1 : i64, tpu.core_type = #tpu.core_type<tc>, window_params = [{transform_indices = @transform_0, window_bounds = array<i64: 16, 32>}, {transform_indices = @transform_1, window_bounds = array<i64: 32, 96>}, {transform_indices = @transform_2, window_bounds = array<i64: 16, 96>}]} {
    %c0_i32 = arith.constant 0 : i32
    %0 = arith.cmpi eq, %arg2, %c0_i32 : i32
    %1 = arith.extui %0 : i1 to i32
    %c0_i32_0 = arith.constant 0 : i32
    %2 = arith.cmpi ne, %1, %c0_i32_0 : i32
    scf.if %2 {
      %cst_10 = arith.constant 0.000000e+00 : f32
      %12 = vector.broadcast %cst_10 : f32 to vector<16x96xf32>
      %c0_11 = arith.constant 0 : index
      %c0_12 = arith.constant 0 : index
      %13 = vector.load %arg6[%c0_11, %c0_12] : memref<16x96xf32, #tpu.memory_space<vmem>>, vector<16x96xf32>
      tpu.vector_store %arg6[%c0_11, %c0_12], %12 {strides = array<i32>} : memref<16x96xf32, #tpu.memory_space<vmem>>, vector<16x96xf32>,
    } else {
    }
    %c0 = arith.constant 0 : index
    %c0_1 = arith.constant 0 : index
    %3 = vector.load %arg6[%c0, %c0_1] : memref<16x96xf32, #tpu.memory_space<vmem>>, vector<16x96xf32>
    %c0_2 = arith.constant 0 : index
    %c0_3 = arith.constant 0 : index
    %4 = vector.load %arg3[%c0_2, %c0_3] : memref<16x32xf32, #tpu.memory_space<vmem>>, vector<16x32xf32>
    %c0_4 = arith.constant 0 : index
    %c0_5 = arith.constant 0 : index
    %5 = vector.load %arg4[%c0_4, %c0_5] : memref<32x96xf32, #tpu.memory_space<vmem>>, vector<32x96xf32>
    %cst = arith.constant dense<0.000000e+00> : vector<16x96xf32>
    %6 = tpu.matmul %4, %5, %cst {dimension_numbers = #tpu.dot_dimension_numbers<[1], [0], [0], [1], [0, 0, 1, 1], [], []>} : vector<16x32xf32>, vector<32x96xf32>, vector<16x96xf32> -> vector<16x96xf32>
    %7 = arith.addf %3, %6 : vector<16x96xf32>
    %c0_6 = arith.constant 0 : index
    %c0_7 = arith.constant 0 : index
    %8 = vector.load %arg6[%c0_6, %c0_7] : memref<16x96xf32, #tpu.memory_space<vmem>>, vector<16x96xf32>
    tpu.vector_store %arg6[%c0_6, %c0_7], %7 {strides = array<i32>} : memref<16x96xf32, #tpu.memory_space<vmem>>, vector<16x96xf32>,
    %c0_i32_8 = arith.constant 0 : i32
    %9 = arith.cmpi eq, %arg2, %c0_i32_8 : i32
    %10 = arith.extui %9 : i1 to i32
    %c0_i32_9 = arith.constant 0 : i32
    %11 = arith.cmpi ne, %10, %c0_i32_9 : i32
    scf.if %11 {
      %c0_10 = arith.constant 0 : index
      %c0_11 = arith.constant 0 : index
      %12 = vector.load %arg6[%c0_10, %c0_11] : memref<16x96xf32, #tpu.memory_space<vmem>>, vector<16x96xf32>
      %c0_12 = arith.constant 0 : index
      %c0_13 = arith.constant 0 : index
      %13 = vector.load %arg5[%c0_12, %c0_13] : memref<16x96xf32, #tpu.memory_space<vmem>>, vector<16x96xf32>
      tpu.vector_store %arg5[%c0_12, %c0_13], %12 {strides = array<i32>} : memref<16x96xf32, #tpu.memory_space<vmem>>, vector<16x96xf32>,
    } else {
    }
    return
  }
  func.func @transform_0(%arg0: i32, %arg1: i32, %arg2: i32) -> (i32, i32) {
    %c0_i32 = arith.constant 0 : i32
    return %arg0, %arg2 : i32, i32
  }
  func.func @transform_1(%arg0: i32, %arg1: i32, %arg2: i32) -> (i32, i32) {
    %c0_i32 = arith.constant 0 : i32
    return %arg2, %arg1 : i32, i32
  }
  func.func @transform_2(%arg0: i32, %arg1: i32, %arg2: i32) -> (i32, i32) {
    %c0_i32 = arith.constant 0 : i32
    return %arg0, %arg1 : i32, i32
  }
}

</mosaic_0001>

<bundles_post_ra>
// kernel: tpu_custom_call.1
= control target key start
LH: loop header
LB: loop body
LE: loop exit
PB: predicated region body
PF: predicated region fallthrough
CT: control target
= control target key end

     0   :  { %7 = vsyncpa [#allocation4], 0  ;;  %s344_s0 = inlined_call_operand.hbm [shape: f32[16,32], index: 0, kind: input, shape index: {}]   ;;  %s345_s1 = inlined_call_operand.hbm [shape: f32[32,96], index: 1, kind: input, shape index: {}]   ;;  %s346_s2 = inlined_call_operand.hbm [shape: f32[16,96], index: 2, kind: output, shape index: {}]  }
   0x1   :  { %8 = vsyncpa [#allocation7], 0 }
   0x2   :  { %9 = vsyncpa [#allocation5], 0  ;;  %s272_s9 = smov [#allocation3]   ;;  %s200_s13 = scalar_lea.hbm %s344_s0, 256 }
   0x3   :  { %s15_s10 = sshll.u32 %s272_s9, 4  ;;  %p201_p0 = scmp.ne.s32.totalorder %s344_s0, %s200_s13  ;;  %s16_s10 = int_to_ptr.vmem [resolvable:$true] %s15_s10 }
   0x4   :  { %p204_p1 = scmp.lt.u32.totalorder %s200_s13, %s344_s0 }
   0x6   :  { %p206_p2 = pnand %p204_p1, %p201_p0 }
   0x8   :  { %209 = shalt.err (!%p206_p2)
}
   0x9   :  { %s210_s18 = scalar_lea.vmem %s16_s10, 256  ;;  %p215_p4 = scmp.lt.s32.totalorder %s16_s10, %s16_s10 }
   0xa   :  { %p211_p3 = scmp.ne.s32.totalorder %s16_s10, %s210_s18  ;;  %p216_p5 = scmp.lt.s32.totalorder %s210_s18, %s210_s18 }
   0xc   :  { %p217_p6 = por %p216_p5, %p215_p4 }
   0xe   :  { %p218_p7 = pnand %p217_p6, %p211_p3 }
  0x10   :  { %221 = shalt.err (!%p218_p7)
}
  0x11   :  { %s273_s19 = smov 128   ;;  %s274_s20 = smov 8  }
  0x12   :  { %21 = dma.hbm_to_vmem [thread:$0]  %s344_s0, 256, %s16_s10, [#allocation4], %s273_s19, %s273_s19, %s274_s20  }
  0x13   :  { %s275_s23 = smov [#allocation6]   ;;  %s222_s27 = scalar_lea.hbm %s345_s1, 512 }
  0x14   :  { %s27_s24 = sshll.u32 %s275_s23, 4  ;;  %p223_p8 = scmp.ne.s32.totalorder %s345_s1, %s222_s27  ;;  %s28_s24 = int_to_ptr.vmem [resolvable:$true] %s27_s24 }
  0x15   :  { %p226_p9 = scmp.lt.u32.totalorder %s222_s27, %s345_s1 }
  0x17   :  { %p228_p10 = pnand %p226_p9, %p223_p8 }
  0x19   :  { %231 = shalt.err (!%p228_p10)
}
  0x1a   :  { %s232_s4 = scalar_lea.vmem %s28_s24, 512  ;;  %p237_p12 = scmp.lt.s32.totalorder %s28_s24, %s28_s24 }
  0x1b   :  { %p233_p11 = scmp.ne.s32.totalorder %s28_s24, %s232_s4  ;;  %p238_p13 = scmp.lt.s32.totalorder %s232_s4, %s232_s4 }
  0x1d   :  { %p239_p0 = por %p238_p13, %p237_p12 }
  0x1f   :  { %p240_p1 = pnand %p239_p0, %p233_p11 }
  0x21   :  { %243 = shalt.err (!%p240_p1)
}
  0x22   :  { %33 = dma.hbm_to_vmem [thread:$0]  %s345_s1, 512, %s28_s24, [#allocation7], %s273_s19, %s273_s19, %s274_s20  }
  0x23   :  { %266 = dma.done.wait [#allocation4], 256  }
  0x24   :  { %267 = vsyncadd [#allocation4], 4294967040 }
  0x25   :  { %268 = dma.done.wait [#allocation7], 512  }
  0x26   :  { %269 = vsyncadd [#allocation7], 4294966784  ;;  %vm44_vm0 = vcmask 785408   ;;  %v276_v0 = vmov 0.0   ;;  %vm55_vm1 = vcmask 261120   ;;  %v51_v1 = vld [vmem:[#allocation6] sm:$0xff] }
  0x27   :  { %46 = vst.msk [vmem:[#allocation2 + $0x8] sm:$0xff] %vm44_vm0, %v276_v0  ;;  %45 = vst.msk [vmem:[#allocation2] sm:$0xff] %vm44_vm0, %v276_v0  ;;  %v52_v2 = vld [vmem:[#allocation6 + $0x8] sm:$0xff]  ;;  %v53_v3 = vld [vmem:[#allocation6 + $0x10] sm:$0xff]  ;;  %s277_s1 = smov [#allocation8]  }
  0x28   :  { %v186_v4 = vpack.c.bf16 %v52_v2, %v51_v1  ;;  %v54_v5 = vld [vmem:[#allocation6 + $0x18] sm:$0xff]  ;;  %v49_v6 = vld [vmem:[#allocation3] sm:$0xff]  ;;  %s154_s6 = sshll.u32 %s277_s1, 4  ;;  %s155_s6 = int_to_ptr.vmem [resolvable:$true] %s154_s6 }
  0x29   :  { %v190_v7 = vpack.c.bf16 %v54_v5, %v53_v3  ;;  %183 = vmatprep.mubr.msk.f32.mxu0 %vm55_vm1, %v49_v6  ;;  %v50_v8 = vld [vmem:[#allocation3 + $0x8] sm:$0xff]  ;;  %s244_s7 = scalar_lea.vmem %s155_s6, 256  ;;  %p249_p3 = scmp.lt.s32.totalorder %s155_s6, %s155_s6 }
  0x2a   :  { %187 = vmatprep.subr.bf16.mxu0 %v186_v4  ;;  %p245_p2 = scmp.ne.s32.totalorder %s155_s6, %s244_s7  ;;  %p250_p4 = scmp.lt.s32.totalorder %s244_s7, %s244_s7 }
  0x2b   :  { %189 = vmatpush3.bf16.msra.mxu0 %v186_v4 }
  0x2c   :  { %191 = vmatprep.subr.bf16.mxu0 %v190_v7  ;;  %p251_p5 = por %p250_p4, %p249_p3 }
  0x2e   :  { %v48_v9 = vld [vmem:[#allocation2 + $0x8] sm:$0xff]  ;;  %v47_v10 = vld [vmem:[#allocation2] sm:$0xff]  ;;  %p252_p6 = pnand %p251_p5, %p245_p2 }
  0x2f   :  { %193 = vmatpush3.bf16.msra.mxu0 %v190_v7 }
  0x32   :  { %184 = vmatmul.mubr.msk.f32.vlgmr.msra.gmra.mrb[0].mxu0 %vm55_vm1, %v50_v8 }
 0x105   :  { %v185_v11 = vpop.f32.mrb[0].mxu0 }
 0x106   :  { %v138_v12 = vadd.f32 %v185_v11, %v48_v9  ;;  %v128_v13 = vpop.f32.mrb[1].mxu0 }
 0x107   :  { %v137_v14 = vadd.f32 %v128_v13, %v47_v10 }
 0x108   :  { %141 = vst.msk [vmem:[#allocation2 + $0x8] sm:$0xff] %vm44_vm0, %v138_v12 }
 0x109   :  { %140 = vst.msk [vmem:[#allocation2] sm:$0xff] %vm44_vm0, %v137_v14 }
 0x10f   :  { %v146_v15 = vld [vmem:[#allocation2 + $0x8] sm:$0xff] }
 0x110   :  { %v145_v16 = vld [vmem:[#allocation2] sm:$0xff]  ;;  %148 = vst.msk [vmem:[#allocation8 + $0x8] sm:$0xff] %vm44_vm0, %v146_v15 }
 0x111   :  { %147 = vst.msk [vmem:[#allocation8] sm:$0xff] %vm44_vm0, %v145_v16 }
 0x112   :  { %255 = shalt.err (!%p252_p6)
}
 0x113   :  { %s256_s10 = scalar_lea.hbm %s346_s2, 256 }
 0x114   :  { %p257_p7 = scmp.ne.s32.totalorder %s346_s2, %s256_s10  ;;  %p260_p8 = scmp.lt.u32.totalorder %s256_s10, %s346_s2 }
 0x116   :  { %p262_p9 = pnand %p260_p8, %p257_p7 }
 0x118   :  { %265 = shalt.err (!%p262_p9)
}
 0x119   :  { %160 = dma.vmem_to_hbm [thread:$0]  %s155_s6, 256, %s346_s2, [#allocation5], %s273_s19, %s273_s19, %s274_s20  }
 0x11a   :  { %270 = dma.done.wait [#allocation5], 256  }
 0x11b   :  { %271 = vsyncadd [#allocation5], 4294967040 }
 0x11c   :  { %164 = vsyncpa [#allocation4], 1 }
 0x11d   :  { %165 = vsyncpa [#allocation7], 1 }
 0x11e   :  { %166 = vsyncpa [#allocation5], 1 }

</bundles_post_ra>
